<compile_context>
chip_gen: v5e
topology: v5e:2x2
jax: 0.10.0
libtpu: 0.0.40
codegen_flags: <defaults>
</compile_context>

<pallas_src>
import functools

import jax
import jax.numpy as jnp
from jax import lax
from jax.experimental import pallas as pl
from jax.experimental.pallas import tpu as pltpu

B, C_IN, H, W = 2, 1, 28, 28
C_OUT = 2
P = H * W                 # 784
FEAT = C_OUT * P          # 1568
NCLS = 10


def fused_kernel(cw_ref, cb3_ref, x_ref, w_ref, fb_ref, o_ref):
    # cw_ref : (2,)        SMEM -- conv1 weight (1x1 kernel, 1 in-channel) per out-channel
    # cb3_ref: (2,)        SMEM -- conv1 bias per out-channel, with h_sigmoid's +3 folded in
    # x_ref  : (B, 784)    VMEM -- flattened single-channel input
    # w_ref  : (10, 1568)  VMEM -- fc weight in natural PyTorch layout (K=1568 on lanes)
    # fb_ref : (1, 10)     VMEM -- fc bias
    # o_ref  : (B, 10)     VMEM -- softmax probabilities
    x = x_ref[...]                                               # (B, 784) f32

    # 1x1 conv (scalar mul+add per out-channel) + un-scaled h_sigmoid clip.
    # The +3 is already folded into cb3 on the scalar path; the /6 is folded
    # through the matmul below (exact: dot is linear).
    h0 = jnp.clip(x * cw_ref[0] + cb3_ref[0], 0.0, 6.0)          # (B, 784)
    h1 = jnp.clip(x * cw_ref[1] + cb3_ref[1], 0.0, 6.0)          # (B, 784)
    # NCHW flatten order: feature index = c*784 + h*28 + w  ->  lane concat.
    hs = jnp.concatenate([h0, h1], axis=-1)                      # (B, 1568)

    # Single MXU matmul, contracting over K=1568; RHS contracting dim is last
    # so both operands keep the long dim on lanes (no lane padding).
    acc = lax.dot_general(
        hs, w_ref[...],
        dimension_numbers=(((1,), (1,)), ((), ())),
        preferred_element_type=jnp.float32)                      # (B, 10)

    logits = acc * (1.0 / 6.0) + fb_ref[...]                     # fold h_sigmoid /6 here

    # softmax over class dim (PyTorch nn.Softmax() on 2-D input -> dim=1)
    m = jnp.max(logits, axis=-1, keepdims=True)
    e = jnp.exp(logits - m)
    o_ref[...] = e / jnp.sum(e, axis=-1, keepdims=True)


def pack_params(conv_w, conv_b, fc_w, fc_b):
    """One-time parameter packing (hoisted out of the per-call path).

    fc_w stays in its natural (10, 1568) PyTorch layout — no repack, no
    per-channel (784, 10) slabs, no lane-padded HBM copy.
    """
    cw = conv_w.reshape(C_OUT).astype(jnp.float32)               # (2,1,1,1) -> (2,)
    cb3 = conv_b.reshape(C_OUT).astype(jnp.float32) + 3.0        # fold h_sigmoid +3
    w = fc_w.astype(jnp.float32)                                 # (10, 1568)
    fb = fc_b.reshape(1, NCLS).astype(jnp.float32)               # (1, 10)
    return cw, cb3, w, fb


@functools.partial(jax.jit, static_argnames=())
def cnn_mnist_hswish_forward(x, cw, cb3, w, fb):
    # x: (B, 1, 28, 28) float32 (NCHW, like PyTorch)
    x2d = x.reshape(B, P).astype(jnp.float32)                    # single input channel
    return pl.pallas_call(
        fused_kernel,
        out_shape=jax.ShapeDtypeStruct((B, NCLS), jnp.float32),
        in_specs=[
            pl.BlockSpec(memory_space=pltpu.MemorySpace.SMEM),   # cw  (2,)
            pl.BlockSpec(memory_space=pltpu.MemorySpace.SMEM),   # cb3 (2,)
            pl.BlockSpec(memory_space=pltpu.MemorySpace.VMEM),   # x2d (B, 784)
            pl.BlockSpec(memory_space=pltpu.MemorySpace.VMEM),   # w   (10, 1568)
            pl.BlockSpec(memory_space=pltpu.MemorySpace.VMEM),   # fb  (1, 10)
        ],
        out_specs=pl.BlockSpec(memory_space=pltpu.MemorySpace.VMEM),
        # TODO(synk): if B ever grows beyond this toy size, add a batch grid
        # with dimension_semantics=("parallel",) to use both v7x TensorCores.
    )(cw, cb3, x2d, w, fb)


def _xavier_uniform(key, shape, fan_in, fan_out):
    bound = (6.0 / (fan_in + fan_out)) ** 0.5
    return jax.random.uniform(key, shape, jnp.float32, -bound, bound)


def _reference(x, conv_w, conv_b, fc_w, fc_b):
    # Pure-JAX reference of the PyTorch forward (conv1x1 -> h_sigmoid -> fc -> softmax).
    y = x.reshape(B, 1, P) * conv_w.reshape(1, C_OUT, 1) + conv_b.reshape(1, C_OUT, 1)
    hs = jnp.clip(y + 3.0, 0.0, 6.0) / 6.0                       # h_sigmoid: relu6(x+3)/6
    flat = hs.reshape(B, FEAT)
    logits = flat @ fc_w.T + fc_b
    return jax.nn.softmax(logits, axis=1)


if __name__ == "__main__":
    key = jax.random.PRNGKey(0)
    kx, kcw, kfw = jax.random.split(key, 3)

    x = jax.random.normal(kx, (B, C_IN, H, W), dtype=jnp.float32)

    # Deterministic parameter init matching nn.init in the module.
    conv_w = _xavier_uniform(kcw, (C_OUT, C_IN, 1, 1), fan_in=1, fan_out=2)
    conv_b = jnp.zeros((C_OUT,), jnp.float32)
    fc_w = _xavier_uniform(kfw, (NCLS, FEAT), fan_in=FEAT, fan_out=NCLS)
    fc_b = jnp.zeros((NCLS,), jnp.float32)

    # Pack parameters ONCE (weights are static), then call the kernel.
    packed = pack_params(conv_w, conv_b, fc_w, fc_b)
    out = cnn_mnist_hswish_forward(x, *packed)
    out = jax.block_until_ready(out)

    ref = _reference(x, conv_w, conv_b, fc_w, fc_b)
    assert out.shape == (B, NCLS)
    assert jnp.allclose(out, ref, atol=1e-5, rtol=1e-5), "mismatch vs reference"

    print("KERNEL_OK")
</pallas_src>

<mosaic_0001>
module attributes {stable_mosaic.version = 11 : i64} {
  func.func @fused_kernel(%arg0: memref<2xf32, #tpu.memory_space<smem>>, %arg1: memref<2xf32, #tpu.memory_space<smem>>, %arg2: memref<2x784xf32, #tpu.memory_space<vmem>>, %arg3: memref<10x1568xf32, #tpu.memory_space<vmem>>, %arg4: memref<1x10xf32, #tpu.memory_space<vmem>>, %arg5: memref<2x10xf32, #tpu.memory_space<vmem>>) attributes {dimension_semantics = [], scalar_prefetch = 0 : i64, scratch_operands = 0 : i64, tpu.core_type = #tpu.core_type<tc>} {
    %c0 = arith.constant 0 : index
    %c0_0 = arith.constant 0 : index
    %0 = vector.load %arg2[%c0, %c0_0] : memref<2x784xf32, #tpu.memory_space<vmem>>, vector<2x784xf32>
    %c0_1 = arith.constant 0 : index
    %1 = memref.load %arg0[%c0_1] : memref<2xf32, #tpu.memory_space<smem>>
    %2 = vector.broadcast %1 : f32 to vector<2x784xf32>
    %3 = arith.mulf %0, %2 : vector<2x784xf32>
    %c0_2 = arith.constant 0 : index
    %4 = memref.load %arg1[%c0_2] : memref<2xf32, #tpu.memory_space<smem>>
    %5 = vector.broadcast %4 : f32 to vector<2x784xf32>
    %6 = arith.addf %3, %5 : vector<2x784xf32>
    %cst = arith.constant 0.000000e+00 : f32
    %cst_3 = arith.constant 6.000000e+00 : f32
    %7 = vector.broadcast %cst : f32 to vector<2x784xf32>
    %8 = arith.maximumf %7, %6 : vector<2x784xf32>
    %9 = vector.broadcast %cst_3 : f32 to vector<2x784xf32>
    %10 = arith.minimumf %9, %8 : vector<2x784xf32>
    %c1 = arith.constant 1 : index
    %11 = memref.load %arg0[%c1] : memref<2xf32, #tpu.memory_space<smem>>
    %12 = vector.broadcast %11 : f32 to vector<2x784xf32>
    %13 = arith.mulf %0, %12 : vector<2x784xf32>
    %c1_4 = arith.constant 1 : index
    %14 = memref.load %arg1[%c1_4] : memref<2xf32, #tpu.memory_space<smem>>
    %15 = vector.broadcast %14 : f32 to vector<2x784xf32>
    %16 = arith.addf %13, %15 : vector<2x784xf32>
    %cst_5 = arith.constant 0.000000e+00 : f32
    %cst_6 = arith.constant 6.000000e+00 : f32
    %17 = vector.broadcast %cst_5 : f32 to vector<2x784xf32>
    %18 = arith.maximumf %17, %16 : vector<2x784xf32>
    %19 = vector.broadcast %cst_6 : f32 to vector<2x784xf32>
    %20 = arith.minimumf %19, %18 : vector<2x784xf32>
    %21 = tpu.concatenate %10, %20 in 1 : vector<2x784xf32>, vector<2x784xf32> -> vector<2x1568xf32>
    %c0_7 = arith.constant 0 : index
    %c0_8 = arith.constant 0 : index
    %22 = vector.load %arg3[%c0_7, %c0_8] : memref<10x1568xf32, #tpu.memory_space<vmem>>, vector<10x1568xf32>
    %cst_9 = arith.constant dense<0.000000e+00> : vector<2x10xf32>
    %23 = tpu.matmul %21, %22, %cst_9 {dimension_numbers = #tpu.dot_dimension_numbers<[1], [1], [0], [0], [0, 0, 1, 0], [], []>} : vector<2x1568xf32>, vector<10x1568xf32>, vector<2x10xf32> -> vector<2x10xf32>
    %cst_10 = arith.constant 0.166666672 : f32
    %24 = vector.broadcast %cst_10 : f32 to vector<2x10xf32>
    %25 = arith.mulf %23, %24 : vector<2x10xf32>
    %c0_11 = arith.constant 0 : index
    %c0_12 = arith.constant 0 : index
    %26 = vector.load %arg4[%c0_11, %c0_12] : memref<1x10xf32, #tpu.memory_space<vmem>>, vector<1x10xf32>
    %27 = vector.broadcast %26 : vector<1x10xf32> to vector<2x10xf32>
    %28 = arith.addf %25, %27 : vector<2x10xf32>
    %cst_13 = arith.constant dense<0xFF800000> : vector<2xf32>
    %29 = vector.multi_reduction <maximumf>, %28, %cst_13 [1] : vector<2x10xf32> to vector<2xf32>
    %30 = vector.shape_cast %29 : vector<2xf32> to vector<2x1xf32>
    %31 = vector.broadcast %30 : vector<2x1xf32> to vector<2x10xf32>
    %32 = arith.subf %28, %31 : vector<2x10xf32>
    %33 = math.exp %32 : vector<2x10xf32>
    %cst_14 = arith.constant dense<0.000000e+00> : vector<2xf32>
    %34 = vector.multi_reduction <add>, %33, %cst_14 [1] : vector<2x10xf32> to vector<2xf32>
    %35 = vector.shape_cast %34 : vector<2xf32> to vector<2x1xf32>
    %36 = vector.broadcast %35 : vector<2x1xf32> to vector<2x10xf32>
    %37 = arith.divf %33, %36 : vector<2x10xf32>
    %c0_15 = arith.constant 0 : index
    %c0_16 = arith.constant 0 : index
    %38 = vector.load %arg5[%c0_15, %c0_16] : memref<2x10xf32, #tpu.memory_space<vmem>>, vector<2x10xf32>
    tpu.vector_store %arg5[%c0_15, %c0_16], %37 {strides = array<i32>} : memref<2x10xf32, #tpu.memory_space<vmem>>, vector<2x10xf32>,
    return
  }
}

</mosaic_0001>

<bundles_post_ra>
// kernel: cnn_mnist_hswish_forward.1
= control target key start
LH: loop header
LB: loop body
LE: loop exit
PB: predicated region body
PF: predicated region fallthrough
CT: control target
= control target key end

     0   :  { %10 = vsyncpa [#allocation5], 0  ;;  %s671_s0 = inlined_call_operand.vmem [shape: f32[2], index: 0, kind: input, shape index: {}]   ;;  %s672_s1 = inlined_call_operand.vmem [shape: f32[2], index: 1, kind: input, shape index: {}]   ;;  %s673_s2 = inlined_call_operand.vmem [shape: f32[2,784], index: 2, kind: input, shape index: {}]   ;;  %s674_s3 = inlined_call_operand.hbm [shape: f32[10,1568], index: 3, kind: input, shape index: {}]   ;;  %s675_s4 = inlined_call_operand.vmem [shape: f32[1,10], index: 4, kind: input, shape index: {}]   ;;  %s676_s5 = inlined_call_operand.hbm [shape: f32[2,10], index: 5, kind: output, shape index: {}]  }
   0x1   :  { %11 = vsyncpa [#allocation7], 0 }
   0x2   :  { %12 = vsyncpa [#allocation3], 0 }
   0x3   :  { %13 = vsyncpa [#allocation4], 0  ;;  %s19_s20 = sshll.u32 %s671_s0, 4  ;;  %s28_s23 = sshll.u32 %s672_s1, 4  ;;  %s20_s20 = int_to_ptr.vmem [resolvable:$true] %s19_s20  ;;  %s29_s23 = int_to_ptr.vmem [resolvable:$true] %s28_s23 }
   0x4   :  { %s600_s24 = smov [#allocation2]   ;;  %s601_s25 = smov [#allocation6]  }
   0x5   :  { %22 = dma.vmem_to_smem %s20_s20, 16, %s600_s24, [#allocation5]  }
   0x6   :  { %31 = dma.vmem_to_smem %s29_s23, 16, %s601_s25, [#allocation7]  }
   0x7   :  { %s38_s28 = sshll.u32 %s674_s3, 4  ;;  %s602_s29 = smov [#allocation8]   ;;  %s39_s28 = int_to_ptr.hbm [resolvable:$true] %s38_s28 }
   0x8   :  { %s40_s30 = sshll.u32 %s602_s29, 4  ;;  %s603_s6 = smov 1664   ;;  %s41_s30 = int_to_ptr.vmem [resolvable:$true] %s40_s30 }
   0x9   :  { %s604_s0 = smov 104  }
   0xa   :  { %46 = dma.hbm_to_vmem [thread:$0]  %s39_s28, 3328, %s41_s30, [#allocation3], %s603_s6, %s603_s6, %s604_s0  }
   0xb   :  { %592 = dma.done.wait [#allocation5], 16  }
   0xc   :  { %593 = vsyncadd [#allocation5], 4294967280 }
   0xd   :  { %594 = dma.done.wait [#allocation7], 16  }
   0xe   :  { %595 = vsyncadd [#allocation7], 4294967280 }
   0xf   :  { %596 = dma.done.wait [#allocation3], 3328  }
  0x10   :  { %597 = vsyncadd [#allocation3], 4294963968 }
  0x11   :  { %61 = sfence }
  0x12   :  { %s64_s1 = sld [smem:[#allocation2]]  ;;  %v62_v0 = vld [vmem:[%s673_s2] sm:$0xff]  ;;  %v63_v1 = vld [vmem:[%s673_s2 + $0x8] sm:$0x3f]  ;;  %v160_v12 = vld [vmem:[#allocation8 + $0x68] sm:$0x3] }
  0x13   :  { %s68_s7 = sld [smem:[#allocation6]]  ;;  %v162_v13 = vld [vmem:[#allocation8 + $0x78] sm:$0x3]  ;;  %196 = vmatpush.xpose.msra.mxu0 %v160_v12  ;;  %v161_v16 = vld [vmem:[#allocation8 + $0x70] sm:$0x3]  ;;  %v147_v19 = vld [vmem:[#allocation8] sm:$0xff] }
  0x14   :  { %s493_s8 = sld [smem:[#allocation2 + $0x1]]  ;;  %236 = vmatpush.xpose.msra.mxu2 %v162_v13  ;;  %v163_v17 = vld [vmem:[#allocation8 + $0x80] sm:$0x3]  ;;  %216 = vmatpush.xpose.msra.mxu1 %v161_v16  ;;  %v149_v20 = vld [vmem:[#allocation8 + $0x10] sm:$0xff]  ;;  %v164_v24 = vld [vmem:[#allocation8 + $0x88] sm:$0x3] }
  0x15   :  { %s494_s9 = sld [smem:[#allocation6 + $0x1]]  ;;  %256 = vmatpush.xpose.msra.mxu3 %v163_v17  ;;  %v148_v25 = vld [vmem:[#allocation8 + $0x8] sm:$0xff]  ;;  %v150_v26 = vld [vmem:[#allocation8 + $0x18] sm:$0xff]  ;;  %v165_v28 = vld [vmem:[#allocation8 + $0x90] sm:$0x3]  ;;  %s605_s2 = smov 16  }
  0x16   :  { %v166_v27 = vld [vmem:[#allocation8 + $0x98] sm:$0x3]  ;;  %v167_v29 = vld [vmem:[#allocation8 + $0xa0] sm:$0x3]  ;;  %v153_v33 = vld [vmem:[#allocation8 + $0x30] sm:$0xff]  ;;  %vm173_vm0 = vcmask 261120  }
  0x17   :  { %197 = vmatpush.xpose.msra.mxu0 %v147_v19  ;;  %v151_v32 = vld [vmem:[#allocation8 + $0x20] sm:$0xff]  ;;  %v168_v36 = vld [vmem:[#allocation8 + $0xa8] sm:$0x3]  ;;  %v154_v54 = vld [vmem:[#allocation8 + $0x38] sm:$0xff]  ;;  %vm133_vm1 = vcmask 130048   ;;  %vm448_vm2 = vcmask 74752  }
  0x18   :  { %v65_v2 = vstv %s64_s1  ;;  %237 = vmatpush.xpose.msra.mxu2 %v149_v20  ;;  %217 = vmatpush.xpose.msra.mxu1 %v148_v25  ;;  %v152_v53 = vld [vmem:[#allocation8 + $0x28] sm:$0xff]  ;;  %v155_v55 = vld [vmem:[#allocation8 + $0x40] sm:$0xff]  ;;  %v170_v56 = vld [vmem:[#allocation8 + $0xb8] sm:$0x3]  ;;  %s481_s18 = sshll.u32 %s676_s5, 4  ;;  %s482_s18 = int_to_ptr.hbm [resolvable:$true] %s481_s18 }
  0x19   :  { %v66_v3 = vmul.f32 %v65_v2, %v62_v0  ;;  %v69_v4 = vstv %s68_s7  ;;  %v67_v5 = vmul.f32 %v65_v2, %v63_v1  ;;  %257 = vmatpush.xpose.msra.mxu3 %v150_v26  ;;  %v169_v57 = vld [vmem:[#allocation8 + $0xb0] sm:$0x3]  ;;  %v171_v58 = vld [vmem:[#allocation8 + $0xc0] sm:$0x3]  ;;  %v172_v59 = vld [vmem:[#allocation8 + $0xc8] sm:$0x3] }
  0x1a   :  { %v77_v6 = vstv %s493_s8  ;;  %v157_v60 = vld [vmem:[#allocation8 + $0x50] sm:$0xff]  ;;  %v156_v61 = vld [vmem:[#allocation8 + $0x48] sm:$0xff]  ;;  %v158_v62 = vld [vmem:[#allocation8 + $0x58] sm:$0xff] }
  0x1b   :  { %v70_v7 = vadd.f32 %v69_v4, %v66_v3  ;;  %v78_v8 = vmul.f32 %v77_v6, %v62_v0  ;;  %v81_v9 = vstv %s494_s9  ;;  %v71_v10 = vadd.f32 %v69_v4, %v67_v5  ;;  %276 = vmatpush.xpose.msrb.mxu0 %v164_v24  ;;  %v159_v63 = vld [vmem:[#allocation8 + $0x60] sm:$0xff] }
  0x1c   :  { %v79_v11 = vmul.f32 %v77_v6, %v63_v1  ;;  %316 = vmatpush.xpose.msrb.mxu2 %v166_v27  ;;  %296 = vmatpush.xpose.msrb.mxu1 %v165_v28 }
  0x1d   :  { %v72_v14 = vmax.f32 %v70_v7, 0.0  ;;  %v73_v15 = vmax.f32 %v71_v10, 0.0  ;;  %v82_v18 = vadd.f32 %v81_v9, %v78_v8  ;;  %336 = vmatpush.xpose.msrb.mxu3 %v167_v29 }
  0x1e   :  { %v83_v23 = vadd.f32 %v81_v9, %v79_v11 }
  0x1f   :  { %v74_v21 = vmin.f32 %v72_v14, 6.0  ;;  %v75_v22 = vmin.f32 %v73_v15, 6.0  ;;  %v84_v30 = vmax.f32 %v82_v18, 0.0  ;;  %277 = vmatpush.xpose.msrb.mxu0 %v151_v32 }
  0x20   :  { %v85_v31 = vmax.f32 %v83_v23, 0.0  ;;  %317 = vmatpush.xpose.msrb.mxu2 %v153_v33  ;;  %297 = vmatpush.xpose.msrb.mxu1 %v152_v53 }
  0x21   :  { %90 = vst [vmem:[#allocation1] ss:$4 sm:$0xff] %v74_v21  ;;  %v86_v34 = vmin.f32 %v84_v30, 6.0  ;;  %337 = vmatpush.xpose.msrb.mxu3 %v154_v54 }
  0x22   :  { %92 = vst [vmem:[#allocation1 + $0x20] ss:$4 sm:$0xff] %v75_v22  ;;  %v87_v35 = vmin.f32 %v85_v31, 6.0 }
  0x28   :  { %v93_v37 = vld.sshfl [vmem:[#allocation1] sm:$0xff pattern:$0x73625140]  ;;  %v94_v38 = vld.sshfl [vmem:[#allocation1 + $0x8] sm:$0xff pattern:$0x73625140] }
  0x29   :  { %v95_v39 = vld.sshfl [vmem:[#allocation1 + $0x10] sm:$0xff pattern:$0x73625140]  ;;  %v96_v40 = vld.sshfl [vmem:[#allocation1 + $0x18] sm:$0xff pattern:$0x73625140]  ;;  %198 = vmatmul.f32.vlgmr.msra.gmra.mxu0 %v93_v37  ;;  %218 = vmatmul.f32.vlgmr.msra.gmra.mxu1 %v94_v38 }
  0x2a   :  { %109 = vst [vmem:[#allocation1] ss:$4 sm:$0xff] %v86_v34  ;;  %v97_v41 = vld.sshfl [vmem:[#allocation1 + $0x20] sm:$0xff pattern:$0x73625140]  ;;  %238 = vmatmul.f32.vlgmr.msra.gmra.mxu2 %v95_v39  ;;  %258 = vmatmul.f32.vlgmr.msra.gmra.mxu3 %v96_v40 }
  0x2b   :  { %v98_v42 = vld.sshfl [vmem:[#allocation1 + $0x28] sm:$0xff pattern:$0x73625140]  ;;  %v99_v43 = vld.sshfl [vmem:[#allocation1 + $0x30] sm:$0xff pattern:$0x73625140]  ;;  %356 = vmatpush.xpose.msra.mxu0 %v168_v36  ;;  %396 = vmatpush.xpose.msra.mxu2 %v170_v56 }
  0x2c   :  { %111 = vst [vmem:[#allocation1 + $0x20] ss:$4 sm:$0xff] %v87_v35  ;;  %376 = vmatpush.xpose.msra.mxu1 %v169_v57  ;;  %416 = vmatpush.xpose.msra.mxu3 %v171_v58 }
  0x2f   :  { %357 = vmatpush.xpose.msra.mxu0 %v155_v55  ;;  %397 = vmatpush.xpose.msra.mxu2 %v157_v60 }
  0x30   :  { %377 = vmatpush.xpose.msra.mxu1 %v156_v61  ;;  %417 = vmatpush.xpose.msra.mxu3 %v158_v62 }
  0x31   :  { %v112_v44 = vld.sshfl [vmem:[#allocation1] sm:$0xff pattern:$0x73625140]  ;;  %v113_v45 = vld.sshfl [vmem:[#allocation1 + $0x8] sm:$0xff pattern:$0x73625140]  ;;  %278 = vmatmul.f32.vlgmr.msrb.gmra.mxu0 %v97_v41  ;;  %298 = vmatmul.f32.vlgmr.msrb.gmra.mxu1 %v98_v42 }
  0x32   :  { %v505_v46 = vpack.i.bf16 %v113_v45, %v112_v44  ;;  %v114_v47 = vld.sshfl [vmem:[#allocation1 + $0x10] sm:$0xff pattern:$0x73625140]  ;;  %v115_v49 = vld.sshfl [vmem:[#allocation1 + $0x18] sm:$0xff pattern:$0x73625140] }
  0x33   :  { %123 = vrot.lane.b32.xlu1 %v114_v47, %s605_s2  ;;  %v118_v48 = vld.sshfl [vmem:[#allocation1 + $0x30] sm:$0xff pattern:$0x73625140]  ;;  %v116_v50 = vld.sshfl [vmem:[#allocation1 + $0x20] sm:$0xff pattern:$0x73625140]  ;;  %495 = vmatpush.xpose.msk.msrb.mxu0 %vm173_vm0, %v172_v59 }
  0x34   :  { %506 = vrot.lane.b32.xlu0 %v505_v46, %s605_s2  ;;  %131 = vrot.lane.b32.xlu2 %v118_v48, %s605_s2  ;;  %v510_v51 = vpack.i.bf16 %v116_v50, %v115_v49  ;;  %v117_v52 = vld.sshfl [vmem:[#allocation1 + $0x28] sm:$0xff pattern:$0x73625140]  ;;  %v515_v41 = vld [vmem:[%s675_s4] ss:$0 sm:$0xff]  ;;  %s606_s4 = smov [#allocation9]  }
  0x35   :  { %s479_s15 = sshll.u32 %s606_s4, 4  ;;  %s480_s15 = int_to_ptr.vmem [resolvable:$true] %s479_s15 }
  0x37   :  { %496 = vmatpush.xpose.msk.msrb.mxu0 %vm173_vm0, %v159_v63 }
  0x3b   :  { %129 = vrot.lane.b32.xlu1 %v117_v52, %s605_s2 }
  0x3c   :  { %511 = vrot.lane.b32.xlu0 %v510_v51, %s605_s2 }
  0x8e   :  { %v132_v7 = vpop.permute.xlu2 %131 }
  0xa5   :  { %v124_v0 = vpop.permute.xlu1 %123 }
  0xa6   :  { %v507_v1 = vpop.permute.xlu0 %506  ;;  %v199_v16 = vpop.f32.mrf.mxu0 }
  0xa7   :  { %v509_v2 = vunpack.i.h.bf16 %v507_v1  ;;  %v508_v3 = vunpack.i.l.bf16 %v507_v1  ;;  %v219_v17 = vpop.f32.mrf.mxu1 }
  0xa8   :  { %v220_v18 = vadd.f32 %v219_v17, %v199_v16 }
  0xa9   :  { %v135_v4 = vsel %vm133_vm1, %v509_v2, %v124_v0  ;;  %v146_v5 = vsel %vm133_vm1, %v99_v43, %v508_v3  ;;  %v134_v6 = vsel %vm133_vm1, %v508_v3, %v509_v2 }
  0xaa   :  { %318 = vmatmul.f32.vlgmr.msrb.gmra.mxu2 %v146_v5  ;;  %338 = vmatmul.f32.vlgmr.msrb.gmra.mxu3 %v134_v6 }
  0xab   :  { %358 = vmatmul.f32.vlgmr.msra.gmra.mxu0 %v135_v4 }
  0xad   :  { %v130_v9 = vpop.permute.xlu1 %129  ;;  %v239_v19 = vpop.f32.mrf.mxu2 }
  0xae   :  { %v512_v8 = vpop.permute.xlu0 %511  ;;  %v139_v12 = vsel %vm133_vm1, %v130_v9, %v132_v7  ;;  %v240_v20 = vadd.f32 %v239_v19, %v220_v18  ;;  %v259_v21 = vpop.f32.mrf.mxu3 }
  0xaf   :  { %v514_v10 = vunpack.i.h.bf16 %v512_v8  ;;  %v513_v11 = vunpack.i.l.bf16 %v512_v8  ;;  %v279_v23 = vpop.f32.mrf.mxu0  ;;  %v299_v25 = vpop.f32.mrf.mxu1 }
  0xb0   :  { %v260_v22 = vadd.f32 %v259_v21, %v240_v20 }
  0xb1   :  { %v138_v13 = vsel %vm133_vm1, %v514_v10, %v130_v9  ;;  %v136_v14 = vsel %vm133_vm1, %v124_v0, %v513_v11  ;;  %v137_v15 = vsel %vm133_vm1, %v513_v11, %v514_v10 }
  0xb2   :  { %378 = vmatmul.f32.vlgmr.msra.gmra.mxu1 %v136_v14  ;;  %398 = vmatmul.f32.vlgmr.msra.gmra.mxu2 %v137_v15  ;;  %v280_v24 = vadd.f32 %v279_v23, %v260_v22 }
  0xb3   :  { %418 = vmatmul.f32.vlgmr.msra.gmra.mxu3 %v138_v13  ;;  %497 = vmatmul.msk.f32.vlgmr.msrb.gmra.mxu0 %vm173_vm0, %v139_v12 }
  0xb4   :  { %v300_v26 = vadd.f32 %v299_v25, %v280_v24 }
 0x128   :  { %v359_v31 = vpop.f32.mrf.mxu0 }
 0x12d   :  { %v319_v27 = vpop.f32.mrf.mxu2  ;;  %v339_v28 = vpop.f32.mrf.mxu3 }
 0x12e   :  { %v320_v29 = vadd.f32 %v319_v27, %v300_v26 }
 0x12f   :  { %v379_v33 = vpop.f32.mrf.mxu1 }
 0x130   :  { %v340_v30 = vadd.f32 %v339_v28, %v320_v29  ;;  %v439_v39 = vpop.f32.mrf.mxu0 }
 0x132   :  { %v360_v32 = vadd.f32 %v359_v31, %v340_v30 }
 0x134   :  { %v380_v34 = vadd.f32 %v379_v33, %v360_v32 }
 0x135   :  { %v399_v35 = vpop.f32.mrf.mxu2 }
 0x136   :  { %v400_v36 = vadd.f32 %v399_v35, %v380_v34  ;;  %v419_v37 = vpop.f32.mrf.mxu3 }
 0x138   :  { %v420_v38 = vadd.f32 %v419_v37, %v400_v36 }
 0x13a   :  { %v440_v40 = vadd.f32 %v439_v39, %v420_v38 }
 0x13c   :  { %v442_v42 = vmul.f32 0.16666667, %v440_v40 }
 0x13e   :  { %v447_v43 = vadd.f32 %v515_v41, %v442_v42 }
 0x140   :  { %v449_v44 = vsel %vm448_vm2, %v447_v43, -inf }
 0x141   :  { %450 = vmax.xlane.f32.xlu2 %v449_v44 }
 0x1b4   :  { %v451_v45 = vpop.xlane.xlu2 %450 }
 0x1b5   :  { %v452_v46 = vsub.f32 %v447_v43, %v451_v45 }
 0x1b7   :  { %v453_v47 = vmul.f32 1.442695, %v452_v46 }
 0x1b9   :  { %516 = vpow2.f32 %v453_v47 }
 0x1bf   :  { %v517_v48 = vpop.eup %516 }
 0x1c0   :  { %v455_v49 = vsel %vm448_vm2, %v517_v48, 0.0 }
 0x1c1   :  { %456 = vadd.xlane.f32.xlu0 %v455_v49 }
 0x234   :  { %v457_v50 = vpop.xlane.xlu0 %456 }
 0x235   :  { %518 = vrcp.f32 %v457_v50  ;;  %v469_v54 = vand.u32 2147483648, %v457_v50  ;;  %v467_v56 = vand.u32 2147483647, %v457_v50  ;;  %vm463_vm4 = vweird.f32 %v457_v50 }
 0x237   :  { %v470_v58 = vor.u32 1.1754944e-38, %v469_v54  ;;  %vm468_vm6 = vcmp.eq.f32.partialorder %v467_v56, 8.507059e+37 }
 0x23b   :  { %v519_v51 = vpop.eup %518 }
 0x23c   :  { %v459_v52 = vmul.f32 %v519_v51, %v457_v50  ;;  %vm464_vm3 = vweird.f32 %v519_v51 }
 0x23d   :  { %vm465_vm5 = vmor %vm463_vm4, %vm464_vm3 }
 0x23e   :  { %v460_v53 = vsub.f32 1.0, %v459_v52 }
 0x240   :  { %v461_v55 = vmul.f32 %v519_v51, %v460_v53 }
 0x242   :  { %v462_v57 = vadd.f32 %v519_v51, %v461_v55 }
 0x244   :  { %v466_v59 = vsel %vm465_vm5, %v519_v51, %v462_v57 }
 0x245   :  { %v471_v60 = vsel %vm468_vm6, %v470_v58, %v466_v59 }
 0x246   :  { %v472_v61 = vmul.f32 %v517_v48, %v471_v60 }
 0x248   :  { %473 = vst.msk [vmem:[#allocation9] sm:$0x3] %vm448_vm2, %v472_v61 }
 0x249   :  { %484 = dma.vmem_to_hbm [thread:$0]  %s480_s15, 32, %s482_s18, [#allocation4]  }
 0x24a   :  { %598 = dma.done.wait [#allocation4], 32  }
 0x24b   :  { %599 = vsyncadd [#allocation4], 4294967264 }
 0x24c   :  { %489 = vsyncpa [#allocation3], 1 }
 0x24d   :  { %490 = vsyncpa [#allocation4], 1 }
 0x24e   :  { %491 = vsyncpa [#allocation5], 1 }
 0x24f   :  { %492 = vsyncpa [#allocation7], 1 }

</bundles_post_ra>
